<compile_context>
chip_gen: v6e
topology: v6e:2x2x1
jax: 0.10.0
libtpu: 0.0.40
codegen_flags: <defaults>
</compile_context>

<pallas_src>
import math
from functools import partial

import jax
import jax.numpy as jnp
from jax import lax
from jax.experimental import pallas as pl
from jax.experimental.pallas import tpu as pltpu


_ACOS_EPS = 1e-7            # matches safe_acos eps
_NORM_EPS = 1e-12           # matches torch.nn.functional.normalize default eps
_PI = math.pi
_VMEM_LIMIT = 48 << 20      # explicit scoped-VMEM limit; headroom on v7x 64 MiB
_RESIDENT_BUDGET = 24 << 20  # bytes allowed for keeping the full `en` resident


def _acos_clipped(x):
    """acos(clip(x, -1+eps, 1-eps)) via Abramowitz & Stegun 4.4.46.

    The clamp is folded into the |x| path (one jnp.minimum instead of a full
    clip); only mul/add/abs/where on the VPU plus one sqrt on the EUP.
    |error| ~ 2e-8 rad.
    """
    # TODO(synk): swap in a native acos lowering if/when Mosaic supports one.
    ax = jnp.minimum(jnp.abs(x), jnp.float32(1.0 - _ACOS_EPS))
    coeffs = (-0.0012624911, 0.0066700901, -0.0170881256, 0.0308918810,
              -0.0501743046, 0.0889789874, -0.2145988016, 1.5707963050)
    p = jnp.full_like(ax, coeffs[0])
    for c in coeffs[1:]:
        p = p * ax + c
    r = jnp.sqrt(1.0 - ax) * p          # 1 - ax >= eps > 0, no extra clamp
    return jnp.where(x < 0.0, jnp.float32(_PI) - r, r)


# --------------------------------------------------------------------------
# Kernel A: per-row-block L2 normalize + per-block squared-error partials.
# --------------------------------------------------------------------------
def _normalize_mse_kernel(emb_ref, gt_ref, en_ref, sse_ref):
    i = pl.program_id(0)
    e = emb_ref[...].astype(jnp.float32)          # (TA, D)
    g = gt_ref[...].astype(jnp.float32)           # (TA, D)

    diff = e - g
    sse_ref[i] = jnp.sum(diff * diff)             # per-block partial, no carry

    # en = e / max(||e||, eps)  ==  e * rsqrt(max(||e||^2, eps^2))   (EUP rsqrt)
    sq = jnp.sum(e * e, axis=1, keepdims=True)    # (TA, 1)
    en_ref[...] = e * lax.rsqrt(jnp.maximum(sq, jnp.float32(_NORM_EPS * _NORM_EPS)))


# --------------------------------------------------------------------------
# Kernel B: per-pair off-diagonal angle partial sums (upper-triangular pairs).
# --------------------------------------------------------------------------
def _angle_sum_kernel(bi_ref, bj_ref, en_r_ref, en_c_ref, out_ref, *, tb, resident):
    p = pl.program_id(0)
    bi = bi_ref[p]
    bj = bj_ref[p]

    a = en_r_ref[...]                             # (TB, D) f32
    if resident:
        # Column operand is the full `en` resident in VMEM: slice the panel.
        start = bj * tb
        if tb % 8 == 0:
            start = pl.multiple_of(start, 8)
        b = en_c_ref[pl.ds(start, tb), :]         # (TB, D)
    else:
        b = en_c_ref[...]                         # streamed (TB, D) block

    cos = lax.dot_general(a, b, (((1,), (1,)), ((), ())),
                          preferred_element_type=jnp.float32)   # (TB, TB)
    ang = _acos_clipped(cos)
    s_all = jnp.sum(ang)

    @pl.when(bi == bj)
    def _():
        # Diagonal block: subtract the actually-computed diagonal entries.
        row = lax.broadcasted_iota(jnp.int32, (tb, tb), 0)
        col = lax.broadcasted_iota(jnp.int32, (tb, tb), 1)
        diag = jnp.sum(jnp.where(row == col, ang, 0.0))
        out_ref[p] = s_all - diag

    @pl.when(bi != bj)
    def _():
        # Off-diagonal block counted twice (cos matrix is symmetric).
        out_ref[p] = 2.0 * s_all


# --------------------------------------------------------------------------
# Block-size helpers
# --------------------------------------------------------------------------
def _largest_div_mult8(n, cap):
    b = min(cap, n)
    b -= b % 8
    while b >= 8:
        if n % b == 0:
            return b
        b -= 8
    return None


def _pick_rows_a(n, d, target_bytes=2 << 20):
    """Kernel A is streaming: pick the largest row block <= ~target_bytes."""
    if n * d * 4 <= target_bytes or n % 8 != 0:
        return n
    cap = max(8, target_bytes // (d * 4))
    b = _largest_div_mult8(n, cap)
    return b if b is not None else n


def _mxu_rows():
    """Preferred kernel-B tile: 128 for <=v5 (128x128 MXU), 256 for v6e/v7x."""
    try:
        kind = jax.devices()[0].device_kind.lower()
    except Exception:
        return 256
    return 128 if any(v in kind for v in ("v2", "v3", "v4", "v5")) else 256


def _pick_rows_b(n, d, preferred, cap_bytes=4 << 20):
    """Kernel B tile: match the MXU tile, capped by per-operand bytes."""
    if n <= preferred:
        return n
    cap = min(preferred, max(8, cap_bytes // (d * 4)))
    b = _largest_div_mult8(n, cap)
    return b if b is not None else n


# --------------------------------------------------------------------------
# Wrapper
# --------------------------------------------------------------------------
def calibration_loss(embeddings, gt, weight=0.1,
                     block_rows=None, block_rows_a=None, resident=None):
    """Pallas implementation of CalibrationLoss.forward."""
    n, d = embeddings.shape
    if n <= 1:
        # PyTorch returns plain 0.0; keep dtype/shape stable under jit.
        return jnp.float32(0.0)

    # ---- Kernel A: normalize rows + per-block squared-error partials ------
    ta = block_rows_a if block_rows_a is not None else _pick_rows_a(n, d)
    assert n % ta == 0, "kernel A row block must tile N"
    nb_a = n // ta

    en, sse_parts = pl.pallas_call(
        _normalize_mse_kernel,
        grid=(nb_a,),
        in_specs=[
            pl.BlockSpec((ta, d), lambda i: (i, 0)),
            pl.BlockSpec((ta, d), lambda i: (i, 0)),
        ],
        out_specs=(
            # TODO(synk): if D is small/unaligned, repack en lane-dense here.
            pl.BlockSpec((ta, d), lambda i: (i, 0)),
            pl.BlockSpec(memory_space=pltpu.MemorySpace.SMEM),
        ),
        out_shape=(
            jax.ShapeDtypeStruct((n, d), jnp.float32),
            jax.ShapeDtypeStruct((nb_a,), jnp.float32),
        ),
        compiler_params=pltpu.CompilerParams(
            dimension_semantics=("arbitrary",),
            vmem_limit_bytes=_VMEM_LIMIT),
    )(embeddings, gt)

    # ---- Kernel B: upper-triangular block pairs of cos = en @ en.T --------
    tb = block_rows if block_rows is not None else _pick_rows_b(n, d, _mxu_rows())
    assert n % tb == 0, "kernel B row block must tile N"
    nb = n // tb

    pairs = [(i, j) for i in range(nb) for j in range(i, nb)]
    bi_arr = jnp.asarray([p[0] for p in pairs], dtype=jnp.int32)
    bj_arr = jnp.asarray([p[1] for p in pairs], dtype=jnp.int32)

    if resident is None:
        # full en (x2 buffers) + streamed row block (x2 buffers) must fit.
        resident = (2 * n * d * 4 + 4 * tb * d * 4) <= _RESIDENT_BUDGET

    if resident:
        # Column operand = full `en`, DMA'd once and kept resident in VMEM.
        col_spec = pl.BlockSpec((n, d), lambda p, bi, bj: (0, 0))
    else:
        # Fallback: stream a fresh (TB, D) column block per pair.
        # TODO(synk): add K-tiling over D + deeper buffering for huge D.
        col_spec = pl.BlockSpec((tb, d), lambda p, bi, bj: (bj[p], 0))

    ang_parts = pl.pallas_call(
        partial(_angle_sum_kernel, tb=tb, resident=resident),
        grid_spec=pltpu.PrefetchScalarGridSpec(
            num_scalar_prefetch=2,
            grid=(len(pairs),),
            in_specs=[
                pl.BlockSpec((tb, d), lambda p, bi, bj: (bi[p], 0)),
                col_spec,
            ],
            out_specs=pl.BlockSpec(memory_space=pltpu.MemorySpace.SMEM),
        ),
        out_shape=jax.ShapeDtypeStruct((len(pairs),), jnp.float32),
        compiler_params=pltpu.CompilerParams(
            dimension_semantics=("arbitrary",),
            vmem_limit_bytes=_VMEM_LIMIT),
    )(bi_arr, bj_arr, en, en)

    mse = jnp.sum(sse_parts) * (1.0 / float(n * d))
    consistency = jnp.sum(ang_parts) * (1.0 / float(n * (n - 1)))
    return jnp.float32(weight) * consistency + mse


# --------------------------------------------------------------------------
# Pure-JAX reference (mirrors the PyTorch forward)
# --------------------------------------------------------------------------
def _reference_loss(e, g, weight=0.1):
    e = e.astype(jnp.float32)
    g = g.astype(jnp.float32)
    n = e.shape[0]
    mse = jnp.mean((e - g) ** 2)
    en = e / jnp.maximum(jnp.linalg.norm(e, axis=1, keepdims=True), _NORM_EPS)
    cos = jnp.matmul(en, en.T, precision=lax.Precision.HIGHEST)
    ang = jnp.arccos(jnp.clip(cos, -1.0 + _ACOS_EPS, 1.0 - _ACOS_EPS))
    mask = jnp.eye(n, dtype=bool)
    cons = jnp.sum(jnp.where(mask, 0.0, ang)) / (n * (n - 1))
    return weight * cons + mse


if __name__ == "__main__":
    key = jax.random.PRNGKey(0)
    k1, k2, k3, k4 = jax.random.split(key, 4)
    tol = 1e-3

    # 1) Small shape matching the module's (batch, feature) convention.
    N, D = 8, 32
    emb = jax.random.normal(k1, (N, D), dtype=jnp.float32)
    gt = jax.random.normal(k2, (N, D), dtype=jnp.float32)
    loss = jax.block_until_ready(calibration_loss(emb, gt, weight=0.1))
    ref = jax.block_until_ready(_reference_loss(emb, gt, weight=0.1))
    assert abs(float(loss) - float(ref)) < tol, (float(loss), float(ref))

    # 2) Multi-block case: resident-column path + diag/off-diag symmetry path.
    N2, D2 = 32, 128
    emb2 = jax.random.normal(k3, (N2, D2), dtype=jnp.float32)
    gt2 = jax.random.normal(k4, (N2, D2), dtype=jnp.float32)
    loss2 = jax.block_until_ready(
        calibration_loss(emb2, gt2, weight=0.1, block_rows=8, block_rows_a=8))
    ref2 = jax.block_until_ready(_reference_loss(emb2, gt2, weight=0.1))
    assert abs(float(loss2) - float(ref2)) < tol, (float(loss2), float(ref2))

    # 3) Same shape, forcing the streamed-column fallback path.
    loss3 = jax.block_until_ready(
        calibration_loss(emb2, gt2, weight=0.1, block_rows=8, resident=False))
    assert abs(float(loss3) - float(ref2)) < tol, (float(loss3), float(ref2))

    print("KERNEL_OK")
</pallas_src>

<mosaic_0001>
module attributes {stable_mosaic.version = 11 : i64} {
  func.func @_normalize_mse_kernel(%arg0: i32, %arg1: memref<8x32xf32, #tpu.memory_space<vmem>>, %arg2: memref<8x32xf32, #tpu.memory_space<vmem>>, %arg3: memref<8x32xf32, #tpu.memory_space<vmem>>, %arg4: memref<1xf32, #tpu.memory_space<smem>>) attributes {dimension_semantics = [#tpu.dimension_semantics<arbitrary>], iteration_bounds = array<i64: 1>, scalar_prefetch = 0 : i64, scratch_operands = 0 : i64, tpu.core_type = #tpu.core_type<tc>, window_params = [{transform_indices = @transform_0, window_bounds = array<i64: 8, 32>}, {transform_indices = @transform_1, window_bounds = array<i64: 8, 32>}, {transform_indices = @transform_2, window_bounds = array<i64: 8, 32>}, {transform_indices = @transform_3, window_bounds = array<i64: 1>}]} {
    %c0 = arith.constant 0 : index
    %c0_0 = arith.constant 0 : index
    %0 = vector.load %arg1[%c0, %c0_0] : memref<8x32xf32, #tpu.memory_space<vmem>>, vector<8x32xf32>
    %c0_1 = arith.constant 0 : index
    %c0_2 = arith.constant 0 : index
    %1 = vector.load %arg2[%c0_1, %c0_2] : memref<8x32xf32, #tpu.memory_space<vmem>>, vector<8x32xf32>
    %2 = arith.subf %0, %1 : vector<8x32xf32>
    %3 = arith.mulf %2, %2 : vector<8x32xf32>
    %4 = vector.shape_cast %3 : vector<8x32xf32> to vector<1x8x32xf32>
    %cst = arith.constant dense<0.000000e+00> : vector<1xf32>
    %5 = vector.multi_reduction <add>, %4, %cst [1, 2] : vector<1x8x32xf32> to vector<1xf32>
    %6 = vector.shape_cast %5 : vector<1xf32> to vector<1x1x1xf32>
    %7 = vector.extract %6[0, 0, 0] : f32 from vector<1x1x1xf32>
    %8 = arith.index_cast %arg0 : i32 to index
    %9 = memref.load %arg4[%8] : memref<1xf32, #tpu.memory_space<smem>>
    memref.store %7, %arg4[%8] : memref<1xf32, #tpu.memory_space<smem>>
    %10 = arith.mulf %0, %0 : vector<8x32xf32>
    %cst_3 = arith.constant dense<0.000000e+00> : vector<8xf32>
    %11 = vector.multi_reduction <add>, %10, %cst_3 [1] : vector<8x32xf32> to vector<8xf32>
    %12 = vector.shape_cast %11 : vector<8xf32> to vector<8x1xf32>
    %cst_4 = arith.constant 1.000000e-24 : f32
    %13 = vector.broadcast %cst_4 : f32 to vector<8x1xf32>
    %14 = arith.maximumf %12, %13 : vector<8x1xf32>
    %15 = math.rsqrt %14 : vector<8x1xf32>
    %16 = vector.broadcast %15 : vector<8x1xf32> to vector<8x32xf32>
    %17 = arith.mulf %0, %16 : vector<8x32xf32>
    %c0_5 = arith.constant 0 : index
    %c0_6 = arith.constant 0 : index
    %18 = vector.load %arg3[%c0_5, %c0_6] : memref<8x32xf32, #tpu.memory_space<vmem>>, vector<8x32xf32>
    tpu.vector_store %arg3[%c0_5, %c0_6], %17 {strides = array<i32>} : memref<8x32xf32, #tpu.memory_space<vmem>>, vector<8x32xf32>,
    return
  }
  func.func @transform_0(%arg0: i32) -> (i32, i32) {
    %c0_i32 = arith.constant 0 : i32
    %c0_i32_0 = arith.constant 0 : i32
    return %arg0, %c0_i32 : i32, i32
  }
  func.func @transform_1(%arg0: i32) -> (i32, i32) {
    %c0_i32 = arith.constant 0 : i32
    %c0_i32_0 = arith.constant 0 : i32
    return %arg0, %c0_i32 : i32, i32
  }
  func.func @transform_2(%arg0: i32) -> (i32, i32) {
    %c0_i32 = arith.constant 0 : i32
    %c0_i32_0 = arith.constant 0 : i32
    return %arg0, %c0_i32 : i32, i32
  }
  func.func @transform_3(%arg0: i32) -> i32 {
    %c0_i32 = arith.constant 0 : i32
    %c0_i32_0 = arith.constant 0 : i32
    return %c0_i32 : i32
  }
}

</mosaic_0001>

<bundles_post_ra>
// kernel: tpu_custom_call.1
= control target key start
LH: loop header
LB: loop body
LE: loop exit
PB: predicated region body
PF: predicated region fallthrough
CT: control target
= control target key end

     0   :  { %9 = vsyncpa [#allocation3], 0  ;;  %s216_s0 = inlined_call_operand.hbm [shape: f32[8,32], index: 0, kind: input, shape index: {}]   ;;  %s217_s1 = inlined_call_operand.hbm [shape: f32[8,32], index: 1, kind: input, shape index: {}]   ;;  %s218_s2 = inlined_call_operand.hbm [shape: f32[8,32], index: 2, kind: output, shape index: {0}]   ;;  %s219_s3 = inlined_call_operand.hbm [shape: f32[1], index: 3, kind: output, shape index: {1}]  }
   0x1   :  { %10 = vsyncpa [#allocation7], 0 }
   0x2   :  { %11 = vsyncpa [#allocation4], 0 }
   0x3   :  { %12 = vsyncpa [#allocation5], 0  ;;  %s177_s12 = smov [#allocation2]   ;;  %s178_s14 = smov [#allocation6]  }
   0x4   :  { %s19_s13 = sshll.u32 %s177_s12, 4  ;;  %s29_s15 = sshll.u32 %s178_s14, 4  ;;  %s20_s13 = int_to_ptr.vmem [resolvable:$true] %s19_s13  ;;  %s30_s15 = int_to_ptr.vmem [resolvable:$true] %s29_s15 }
   0x5   :  { %s109_s16 = scalar_lea.vmem %s20_s13, 128  ;;  %p114_p1 = scmp.lt.s32.totalorder %s20_s13, %s20_s13 }
   0x6   :  { %p110_p0 = scmp.ne.s32.totalorder %s20_s13, %s109_s16  ;;  %p115_p2 = scmp.lt.s32.totalorder %s109_s16, %s109_s16 }
   0x8   :  { %p116_p3 = por %p115_p2, %p114_p1 }
   0xa   :  { %p117_p4 = pnand %p116_p3, %p110_p0 }
   0xc   :  { %120 = shalt.err (!%p117_p4)
}
   0xd   :  { %22 = dma.hbm_to_vmem [thread:$0]  %s216_s0, 128, %s20_s13, [#allocation3]  }
   0xe   :  { %s129_s19 = scalar_lea.vmem %s30_s15, 128  ;;  %p134_p6 = scmp.lt.s32.totalorder %s30_s15, %s30_s15 }
   0xf   :  { %p130_p5 = scmp.ne.s32.totalorder %s30_s15, %s129_s19  ;;  %p135_p7 = scmp.lt.s32.totalorder %s129_s19, %s129_s19 }
  0x11   :  { %p136_p8 = por %p135_p7, %p134_p6 }
  0x13   :  { %p137_p9 = pnand %p136_p8, %p130_p5 }
  0x15   :  { %140 = shalt.err (!%p137_p9)
}
  0x16   :  { %32 = dma.hbm_to_vmem [thread:$0]  %s217_s1, 128, %s30_s15, [#allocation7]  }
  0x17   :  { %169 = dma.done.wait [#allocation3], 128  }
  0x18   :  { %170 = vsyncadd [#allocation3], 4294967168 }
  0x19   :  { %171 = dma.done.wait [#allocation7], 128  }
  0x1a   :  { %172 = vsyncadd [#allocation7], 4294967168  ;;  %v39_v0 = vld [vmem:[#allocation2] sm:$0xff]  ;;  %v40_v1 = vld [vmem:[#allocation6] sm:$0xff]  ;;  %vm43_vm0 = vcmask 261120   ;;  %s179_s0 = smov [#allocation8]  }
  0x1b   :  { %v41_v2 = vsub.f32 %v39_v0, %v40_v1  ;;  %v56_v4 = vmul.f32 %v39_v0, %v39_v0  ;;  %s70_s1 = sshll.u32 %s179_s0, 4  ;;  %s71_s1 = int_to_ptr.vmem [resolvable:$true] %s70_s1 }
  0x1c   :  { %s141_s22 = scalar_lea.vmem %s71_s1, 128  ;;  %p146_p11 = scmp.lt.s32.totalorder %s71_s1, %s71_s1 }
  0x1d   :  { %v42_v3 = vmul.f32 %v41_v2, %v41_v2  ;;  %v57_v6 = vsel %vm43_vm0, %v56_v4, 0.0  ;;  %p142_p10 = scmp.ne.s32.totalorder %s71_s1, %s141_s22  ;;  %p147_p12 = scmp.lt.s32.totalorder %s141_s22, %s141_s22 }
  0x1f   :  { %v44_v5 = vsel %vm43_vm0, %v42_v3, 0.0  ;;  %p148_p13 = por %p147_p12, %p146_p11 }
  0x20   :  { %45 = vadd.xlane.f32.xlu0 %v44_v5 }
  0x21   :  { %p149_p0 = pnand %p148_p13, %p142_p10 }
  0x24   :  { %58 = vadd.xlane.f32.xlu0 %v57_v6 }
  0xa9   :  { %v46_v7 = vpop.xlane.xlu0 %45 }
  0xaa   :  { %v47_v8 = vrot.slane %v46_v7, 4 }
  0xac   :  { %v48_v9 = vadd.f32 %v47_v8, %v46_v7 }
  0xad   :  { %v59_v10 = vpop.xlane.xlu0 %58 }
  0xae   :  { %v49_v11 = vrot.slane %v48_v9, 2  ;;  %v60_v12 = vmax.f32 %v59_v10, 1e-24 }
  0xb0   :  { %v50_v13 = vadd.f32 %v49_v11, %v48_v9  ;;  %99 = vrsqrt.f32 %v60_v12 }
  0xb2   :  { %v51_v14 = vrot.slane %v50_v13, 1 }
  0xb4   :  { %v52_v15 = vadd.f32 %v51_v14, %v50_v13 }
  0xb6   :  { %93 = vpush %v52_v15 }
  0xbd   :  { %v100_v16 = vpop.eup %99 }
  0xbe   :  { %v62_v17 = vmul.f32 %v100_v16, %v39_v0 }
  0xc0   :  { %63 = vst.msk [vmem:[#allocation8] sm:$0xff] %vm43_vm0, %v62_v17 }
  0xc1   :  { %152 = shalt.err (!%p149_p0)
}
  0xc2   :  { %73 = dma.vmem_to_hbm [thread:$0]  %s71_s1, 128, %s218_s2, [#allocation4]  }
  0xc3   :  { %s180_s26 = smov [#allocation9]  }
  0xe7   :  { %s94_s25 = spop %93 }
  0xe8   :  { %55 = sst [smem:[#allocation9]] %s94_s25 }
  0xe9   :  { %81 = dma.smem_to_hbm %s180_s26, 16, %s219_s3, [#allocation5]  }
  0xea   :  { %173 = dma.done.wait [#allocation4], 128  }
  0xeb   :  { %174 = vsyncadd [#allocation4], 4294967168 }
  0xec   :  { %175 = dma.done.wait [#allocation5], 16  }
  0xed   :  { %176 = vsyncadd [#allocation5], 4294967280 }
  0xee   :  { %88 = sfence }
  0xef   :  { %89 = vsyncpa [#allocation3], 1 }
  0xf0   :  { %90 = vsyncpa [#allocation7], 1 }
  0xf1   :  { %91 = vsyncpa [#allocation4], 1 }
  0xf2   :  { %92 = vsyncpa [#allocation5], 1 }

</bundles_post_ra>
